<compile_context>
chip_gen: v6e
topology: v6e:2x2x1
jax: 0.10.0
libtpu: 0.0.40
codegen_flags: <defaults>
</compile_context>

<pallas_src>
import math

import jax
import jax.numpy as jnp
from jax.experimental import pallas as pl
from jax.experimental.pallas import tpu as pltpu

_SQRT_2_OVER_PI = math.sqrt(2.0 / math.pi)
_GELU_COEF = 0.044715
_C1 = _SQRT_2_OVER_PI * _GELU_COEF  # folded constant


def _gelu_kernel(x_ref, o_ref):
    # Upcast to f32 for the polynomial + tanh (exact for f32 inputs, needed for
    # bf16 precision and for v5e which has no bf16 VPU/EUP path).
    x = x_ref[...].astype(jnp.float32)
    x2 = x * x
    inner = x * (_SQRT_2_OVER_PI + _C1 * x2)
    o_ref[...] = (0.5 * x * (1.0 + jnp.tanh(inner))).astype(o_ref.dtype)


def _round_up(a: int, b: int) -> int:
    return -(-a // b) * b


def _generation_defaults():
    """Returns (block_bytes, vmem_limit_bytes) tuned per TPU generation."""
    try:
        kind = jax.devices()[0].device_kind.lower()
    except Exception:
        kind = ""
    if "v7" in kind:
        # ~2.3x v6e HBM BW -> bigger blocks amortize the ~0.35us/step overhead.
        # 4 MiB blocks => <=16 MiB double-buffered in+out, inside 32 MiB scoped
        # VMEM (64 MiB physical).
        return 4 * 1024 * 1024, 32 * 1024 * 1024
    # v5e scoped-VMEM default is 16 MiB; 2 MiB blocks already reach ~85% of the
    # HBM roofline on v5e/v6e, so keep them and leave the limit alone.
    return 2 * 1024 * 1024, None


def gelu(x: jax.Array, *, alias_input: bool = False) -> jax.Array:
    """Tanh-approx GELU matching the PyTorch reference elementwise."""
    orig_shape = x.shape
    dtype = x.dtype
    n = x.size
    if n == 0:
        return x
    itemsize = jnp.dtype(dtype).itemsize

    # Layout-preserving 2D view: collapse leading dims only.
    if x.ndim == 0:
        x2d = x.reshape(1, 1)
    elif x.ndim == 1:
        x2d = x.reshape(1, orig_shape[0])
    else:
        x2d = x.reshape(-1, orig_shape[-1])
    rows, d = x2d.shape

    block_bytes, vmem_limit = _generation_defaults()

    # Lane blocking: keep the full trailing dim when it fits the budget
    # (mandatory when d % 128 != 0 to stay layout/copy-free); only tile the
    # lane axis (in multiples of 128) for very wide rows.
    sizing_rows = min(rows, 8)
    max_lane = max(128, block_bytes // (sizing_rows * itemsize))
    if d <= max_lane:
        lane_block = d                      # full-extent lane dim (always legal)
    else:
        lane_block = max(128, (max_lane // 128) * 128)

    # Row blocking: ~block_bytes per block (accounting for lane padding to 128),
    # sublane-aligned.  Pallas masks the overhanging last block.
    padded_lane = _round_up(lane_block, 128)
    rows_per_block = max(8, (block_bytes // (padded_lane * itemsize)) // 8 * 8)
    block_rows = rows if rows <= rows_per_block else rows_per_block

    grid_r = pl.cdiv(rows, block_rows)
    grid_l = pl.cdiv(d, lane_block)
    # Megacore: give v7x's 2 TensorCores at least 2 grid steps when possible.
    if grid_r * grid_l == 1 and rows >= 16:
        block_rows = _round_up(pl.cdiv(rows, 2), 8)
        grid_r = pl.cdiv(rows, block_rows)

    cp_kwargs = dict(dimension_semantics=("parallel", "parallel"))
    if vmem_limit is not None:
        cp_kwargs["vmem_limit_bytes"] = vmem_limit

    out2d = pl.pallas_call(
        _gelu_kernel,
        out_shape=jax.ShapeDtypeStruct((rows, d), dtype),
        grid_spec=pltpu.PrefetchScalarGridSpec(
            num_scalar_prefetch=0,
            grid=(grid_r, grid_l),
            in_specs=[pl.BlockSpec((block_rows, lane_block), lambda i, j: (i, j))],
            out_specs=pl.BlockSpec((block_rows, lane_block), lambda i, j: (i, j)),
        ),
        compiler_params=pltpu.CompilerParams(**cp_kwargs),
        cost_estimate=pl.CostEstimate(
            flops=8 * n, transcendentals=n, bytes_accessed=2 * n * itemsize),
        input_output_aliases=({0: 0} if alias_input else {}),
    )(x2d)

    return out2d.reshape(orig_shape)


def gelu_ref(x: jax.Array) -> jax.Array:
    return 0.5 * x * (1.0 + jnp.tanh(
        _SQRT_2_OVER_PI * (x + _GELU_COEF * jnp.power(x, 3))))


if __name__ == "__main__":
    key = jax.random.PRNGKey(0)
    k1, k2, k3 = jax.random.split(key, 3)

    # Primary: f32 NCHW activation; trailing dim (16) kept as full-extent lane
    # block -> no relayout copies, masked lane stores only.
    x = jax.random.normal(k1, (2, 4, 16, 16), dtype=jnp.float32)
    out = jax.block_until_ready(gelu(x))
    ref = gelu_ref(x)
    assert out.shape == x.shape and out.dtype == x.dtype
    assert jnp.allclose(out, ref, atol=1e-5, rtol=1e-5), \
        float(jnp.max(jnp.abs(out - ref)))

    # Lane-dense main path: trailing dim multiple of 128, bf16 I/O (half HBM
    # bytes, f32 math inside the kernel).
    x_bf16 = jax.random.normal(k2, (2, 8, 256), dtype=jnp.bfloat16)
    out_bf16 = jax.block_until_ready(gelu(x_bf16))
    ref_bf16 = gelu_ref(x_bf16.astype(jnp.float32))
    assert out_bf16.dtype == jnp.bfloat16 and out_bf16.shape == x_bf16.shape
    assert jnp.allclose(out_bf16.astype(jnp.float32), ref_bf16,
                        atol=3e-2, rtol=3e-2)

    # 1D odd-length input: exercises the masked partial lane block (no pad,
    # no slice).
    x_1d = jax.random.normal(k3, (1000,), dtype=jnp.float32)
    out_1d = jax.block_until_ready(gelu(x_1d))
    assert out_1d.shape == x_1d.shape
    assert jnp.allclose(out_1d, gelu_ref(x_1d), atol=1e-5, rtol=1e-5)

    # Aliasing smoke test on the layout-preserving path.
    out_alias = jax.block_until_ready(gelu(x, alias_input=True))
    assert jnp.allclose(out_alias, ref, atol=1e-5, rtol=1e-5)

    print("KERNEL_OK")
</pallas_src>

<mosaic_0001>
module attributes {stable_mosaic.version = 11 : i64} {
  func.func @_gelu_kernel(%arg0: i32, %arg1: i32, %arg2: memref<64x16xf32, #tpu.memory_space<vmem>>, %arg3: memref<64x16xf32, #tpu.memory_space<vmem>>) attributes {dimension_semantics = [#tpu.dimension_semantics<parallel>, #tpu.dimension_semantics<parallel>], iteration_bounds = array<i64: 2, 1>, scalar_prefetch = 0 : i64, scratch_operands = 0 : i64, tpu.core_type = #tpu.core_type<tc>, window_params = [{transform_indices = @transform_0, window_bounds = array<i64: 64, 16>}, {transform_indices = @transform_1, window_bounds = array<i64: 64, 16>}]} {
    %c0 = arith.constant 0 : index
    %c0_0 = arith.constant 0 : index
    %0 = vector.load %arg2[%c0, %c0_0] : memref<64x16xf32, #tpu.memory_space<vmem>>, vector<64x16xf32>
    %1 = arith.mulf %0, %0 : vector<64x16xf32>
    %cst = arith.constant 0.0356774069 : f32
    %2 = vector.broadcast %cst : f32 to vector<64x16xf32>
    %3 = arith.mulf %2, %1 : vector<64x16xf32>
    %cst_1 = arith.constant 0.797884583 : f32
    %4 = vector.broadcast %cst_1 : f32 to vector<64x16xf32>
    %5 = arith.addf %4, %3 : vector<64x16xf32>
    %6 = arith.mulf %0, %5 : vector<64x16xf32>
    %cst_2 = arith.constant 5.000000e-01 : f32
    %7 = vector.broadcast %cst_2 : f32 to vector<64x16xf32>
    %8 = arith.mulf %7, %0 : vector<64x16xf32>
    %9 = math.tanh %6 : vector<64x16xf32>
    %cst_3 = arith.constant 1.000000e+00 : f32
    %10 = vector.broadcast %cst_3 : f32 to vector<64x16xf32>
    %11 = arith.addf %10, %9 : vector<64x16xf32>
    %12 = arith.mulf %8, %11 : vector<64x16xf32>
    %c0_4 = arith.constant 0 : index
    %c0_5 = arith.constant 0 : index
    %13 = vector.load %arg3[%c0_4, %c0_5] : memref<64x16xf32, #tpu.memory_space<vmem>>, vector<64x16xf32>
    tpu.vector_store %arg3[%c0_4, %c0_5], %12 {strides = array<i32>} : memref<64x16xf32, #tpu.memory_space<vmem>>, vector<64x16xf32>,
    return
  }
  func.func @transform_0(%arg0: i32, %arg1: i32) -> (i32, i32) {
    %c0_i32 = arith.constant 0 : i32
    return %arg0, %arg1 : i32, i32
  }
  func.func @transform_1(%arg0: i32, %arg1: i32) -> (i32, i32) {
    %c0_i32 = arith.constant 0 : i32
    return %arg0, %arg1 : i32, i32
  }
}

</mosaic_0001>

<bundles_post_ra>
// kernel: tpu_custom_call.1
= control target key start
LH: loop header
LB: loop body
LE: loop exit
PB: predicated region body
PF: predicated region fallthrough
CT: control target
= control target key end

     0   :  { %s395_s6 = smov 0   ;;  %s397_s7 = smov 0   ;;  %s453_s0 = inlined_call_operand.vmem [shape: f32[128,16], index: 0, kind: input, shape index: {}]   ;;  %s454_s1 = inlined_call_operand.vmem [shape: f32[128,16], index: 1, kind: output, shape index: {}]  }
   0x1   :  { %s399_s8 = smov 0  }
   0x2 LB: > { %s23_s9 = sadd.s32 1, %s379_s7  ;;  %p314_p0 = scmp.ge.s32.totalorder %s383_s8, 1  ;;  %s383_s8 = sphi %s399_s8, %s11_s8   ;;  %s379_s7 = sphi %s397_s7, %s456_s7   ;;  %s375_s6 = sphi %s395_s6, %s455_s6  }
   0x3   : > { %p25_p1 = scmp.ge.s32.totalorder %s23_s9, 2  ;;  %p107_p2 = scmp.lt.s32.totalorder %s383_s8, 3 }
   0x5   : > { %s458_s9 = smov (%p25_p1, %s23_s9), 0  ;;  %p108_p3 = pnand %p314_p0, %p107_p2 }
   0x6   : > { %s315_s10 = sshll.u32 (!%p108_p3), %s375_s6, 3 }
   0x7   : > { %111 = sbr.rel (%p108_p3) target bundleno = 50 (0x32), region = 24  ;;  %p134_p4 = scmp.lt.s32.totalorder (!%p108_p3), %s315_s10, 15 }
   0xc   : > { %s460_s10 = smov (!%p134_p4, %s315_s10), 15  ;;  %vm223_vm0 = vcmask 130048  }
   0xd   : > { %s316_s11 = sshll.u32 %s460_s10, 3 }
   0xe   : > { %s140_s14 = scalar_lea.vmem %s453_s0, %s316_s11  ;;  %s426_s17 = scalar_lea.vmem %s454_s1, %s316_s11 }
   0xf   : > { %v151_v0 = vld [vmem:[%s140_s14] sm:$0xff]  ;;  %v152_v1 = vld [vmem:[%s140_s14 + $0x8] sm:$0xff]  ;;  %v153_v2 = vld [vmem:[%s140_s14 + $0x10] sm:$0xff] }
  0x10   : > { %v159_v3 = vmul.f32 %v151_v0, %v151_v0  ;;  %v160_v4 = vmul.f32 %v152_v1, %v152_v1  ;;  %v154_v5 = vld [vmem:[%s140_s14 + $0x18] sm:$0xff]  ;;  %v155_v6 = vld [vmem:[%s140_s14 + $0x20] sm:$0xff]  ;;  %v156_v7 = vld [vmem:[%s140_s14 + $0x28] sm:$0xff]  ;;  %v161_v8 = vmul.f32 %v153_v2, %v153_v2  ;;  %v191_v40 = vmul.f32 0.5, %v151_v0 }
  0x11   : > { %v162_v9 = vmul.f32 %v154_v5, %v154_v5  ;;  %v157_v10 = vld [vmem:[%s140_s14 + $0x30] sm:$0xff]  ;;  %v163_v13 = vmul.f32 %v155_v6, %v155_v6  ;;  %v158_v14 = vld [vmem:[%s140_s14 + $0x38] sm:$0xff]  ;;  %v164_v17 = vmul.f32 %v156_v7, %v156_v7  ;;  %v192_v42 = vmul.f32 0.5, %v152_v1 }
  0x12   : > { %v167_v11 = vmul.f32 0.035677407, %v159_v3  ;;  %v168_v12 = vmul.f32 0.035677407, %v160_v4  ;;  %v169_v15 = vmul.f32 0.035677407, %v161_v8  ;;  %v165_v21 = vmul.f32 %v157_v10, %v157_v10 }
  0x13   : > { %v170_v16 = vmul.f32 0.035677407, %v162_v9  ;;  %v171_v20 = vmul.f32 0.035677407, %v163_v13  ;;  %v172_v24 = vmul.f32 0.035677407, %v164_v17  ;;  %v166_v25 = vmul.f32 %v158_v14, %v158_v14 }
  0x14   : > { %v175_v18 = vadd.f32 0.7978846, %v167_v11  ;;  %v176_v19 = vadd.f32 0.7978846, %v168_v12  ;;  %v177_v22 = vadd.f32 0.7978846, %v169_v15 }
  0x15   : > { %v178_v23 = vadd.f32 0.7978846, %v170_v16  ;;  %v179_v28 = vadd.f32 0.7978846, %v171_v20  ;;  %v173_v29 = vmul.f32 0.035677407, %v165_v21 }
  0x16   : > { %v183_v26 = vmul.f32 %v175_v18, %v151_v0  ;;  %v184_v27 = vmul.f32 %v176_v19, %v152_v1  ;;  %v185_v30 = vmul.f32 %v177_v22, %v153_v2  ;;  %v180_v32 = vadd.f32 0.7978846, %v172_v24 }
  0x17   : > { %v186_v31 = vmul.f32 %v178_v23, %v154_v5  ;;  %v187_v33 = vmul.f32 %v179_v28, %v155_v6  ;;  %v181_v34 = vadd.f32 0.7978846, %v173_v29  ;;  %v174_v35 = vmul.f32 0.035677407, %v166_v25 }
  0x18   : > { %345 = vtanh.f32 %v183_v26  ;;  %v188_v36 = vmul.f32 %v180_v32, %v156_v7  ;;  %v193_v45 = vmul.f32 0.5, %v153_v2  ;;  %v194_v48 = vmul.f32 0.5, %v154_v5 }
  0x19   : > { %347 = vtanh.f32 %v184_v27  ;;  %v189_v37 = vmul.f32 %v181_v34, %v157_v10  ;;  %v182_v38 = vadd.f32 0.7978846, %v174_v35  ;;  %v195_v52 = vmul.f32 0.5, %v155_v6 }
  0x1a   : > { %349 = vtanh.f32 %v185_v30  ;;  %v196_v56 = vmul.f32 0.5, %v156_v7  ;;  %v197_v60 = vmul.f32 0.5, %v157_v10  ;;  %v198_v0 = vmul.f32 0.5, %v158_v14 }
  0x1b   : > { %351 = vtanh.f32 %v186_v31  ;;  %v190_v39 = vmul.f32 %v182_v38, %v158_v14 }
  0x1c   : > { %353 = vtanh.f32 %v187_v33 }
  0x1d   : > { %355 = vtanh.f32 %v188_v36 }
  0x1e   : > { %357 = vtanh.f32 %v189_v37 }
  0x1f   : > { %359 = vtanh.f32 %v190_v39 }
  0x25   : > { %v346_v41 = vpop.eup %345 }
  0x26   : > { %v348_v43 = vpop.eup %347  ;;  %v207_v44 = vadd.f32 1.0, %v346_v41 }
  0x27   : > { %v350_v46 = vpop.eup %349  ;;  %v208_v47 = vadd.f32 1.0, %v348_v43 }
  0x28   : > { %v352_v49 = vpop.eup %351  ;;  %v215_v50 = vmul.f32 %v207_v44, %v191_v40  ;;  %v209_v51 = vadd.f32 1.0, %v350_v46 }
  0x29   : > { %v354_v53 = vpop.eup %353  ;;  %v216_v54 = vmul.f32 %v208_v47, %v192_v42  ;;  %v210_v55 = vadd.f32 1.0, %v352_v49 }
  0x2a   : > { %v356_v57 = vpop.eup %355  ;;  %224 = vst.msk [vmem:[%s426_s17] sm:$0xff] %vm223_vm0, %v215_v50  ;;  %v217_v58 = vmul.f32 %v209_v51, %v193_v45  ;;  %v211_v59 = vadd.f32 1.0, %v354_v53 }
  0x2b   : > { %v358_v61 = vpop.eup %357  ;;  %225 = vst.msk [vmem:[%s426_s17 + $0x8] sm:$0xff] %vm223_vm0, %v216_v54  ;;  %v218_v62 = vmul.f32 %v210_v55, %v194_v48  ;;  %v212_v63 = vadd.f32 1.0, %v356_v57 }
  0x2c   : > { %v360_v1 = vpop.eup %359  ;;  %226 = vst.msk [vmem:[%s426_s17 + $0x10] sm:$0xff] %vm223_vm0, %v217_v58  ;;  %v219_v2 = vmul.f32 %v211_v59, %v195_v52  ;;  %v213_v3 = vadd.f32 1.0, %v358_v61 }
  0x2d   : > { %227 = vst.msk [vmem:[%s426_s17 + $0x18] sm:$0xff] %vm223_vm0, %v218_v62  ;;  %v220_v4 = vmul.f32 %v212_v63, %v196_v56  ;;  %v214_v5 = vadd.f32 1.0, %v360_v1 }
  0x2e   : > { %228 = vst.msk [vmem:[%s426_s17 + $0x20] sm:$0xff] %vm223_vm0, %v219_v2  ;;  %v221_v6 = vmul.f32 %v213_v3, %v197_v60 }
  0x2f   : > { %229 = vst.msk [vmem:[%s426_s17 + $0x28] sm:$0xff] %vm223_vm0, %v220_v4  ;;  %v222_v7 = vmul.f32 %v214_v5, %v198_v0 }
  0x30   : > { %230 = vst.msk [vmem:[%s426_s17 + $0x30] sm:$0xff] %vm223_vm0, %v221_v6 }
  0x31   : > { %231 = vst.msk [vmem:[%s426_s17 + $0x38] sm:$0xff] %vm223_vm0, %v222_v7 }
  0x32 PF: > { %s11_s8 = sadd.s32 1, %s383_s8   ;;  %s455_s6 = smov %s379_s7 }
  0x33   : > { %p8_p5 = scmp.ge.s32.totalorder %s11_s8, 4   ;;  %s456_s7 = smov %s458_s9 }
  0x35   :  { %10 = sbr.rel (!%p8_p5) target bundleno = 2 (0x2), region = 54 }

</bundles_post_ra>
